<compile_context>
chip_gen: v7x
topology: tpu7x:2x2x1
jax: 0.10.0
libtpu: 0.0.40
codegen_flags: <defaults>
</compile_context>

<pallas_src>
import functools

import jax
import jax.numpy as jnp
from jax.experimental import pallas as pl
from jax.experimental.pallas import tpu as pltpu


def _round_up(a, b):
    return (a + b - 1) // b * b


def _tpu_config():
    """Per-generation (block_bytes, vmem_limit_bytes, min_row_blocks)."""
    try:
        kind = jax.devices()[0].device_kind.lower()
    except Exception:
        kind = ""
    if "v7" in kind or "7x" in kind:
        # 64 MiB VMEM per TC, 2 TCs: 4 MiB blocks (16 MiB double-buffered),
        # leave headroom; ask for >=2 row-blocks so both cores get work.
        return 4 * 1024 * 1024, 40 * 1024 * 1024, 2
    if "v6" in kind or "v5p" in kind:
        # 128 MiB VMEM, fast HBM: 4 MiB blocks need the scoped limit raised
        # above the 32 MiB default.
        return 4 * 1024 * 1024, 64 * 1024 * 1024, 1
    if "v5" in kind:
        # v5e: 16 MiB default scoped VMEM; 2 MiB blocks (8 MiB footprint) fit.
        return 2 * 1024 * 1024, None, 1
    # Unknown / older chip: conservative, previously-validated config.
    return 2 * 1024 * 1024, None, 1


def _uniform_quantize_kernel(x_ref, y_ref, *, scale, offset, level):
    # Upcast to f32 regardless of input dtype; casts/VALU ops are free filler
    # on a purely HBM-bound kernel and avoid bf16 rounding of scale/offset.
    x = x_ref[...].astype(jnp.float32)
    y = jnp.floor(x * scale + offset)
    y = jnp.clip(y, 0.0, float(level - 1))
    y_ref[...] = y.astype(y_ref.dtype)


def _forward(x, *, scale, offset, level, block_bytes, vmem_limit, min_blocks):
    orig_shape = x.shape
    n = x.size
    if n == 0:
        return x

    itemsize = jnp.dtype(x.dtype).itemsize
    sublane = {4: 8, 2: 16, 1: 32}.get(itemsize, 8)

    # Widest lane-dense width that divides n -> zero-copy reshape path.
    cols = 512
    for c in (512, 256, 128):
        if n % c == 0:
            cols = c
            break

    rows = pl.cdiv(n, cols)
    n_pad = rows * cols

    # --- row-block sizing -------------------------------------------------
    cap = max(block_bytes // (cols * itemsize), sublane)
    if rows <= sublane or (min_blocks <= 1 and rows <= cap):
        # Single full-extent block: block_shape == array shape, always legal.
        block_rows = rows
    else:
        block_rows = _round_up(cap, sublane)
        if min_blocks > 1:
            # Guarantee >= min_blocks blocks so "parallel" can use both TCs.
            target = _round_up(pl.cdiv(rows, min_blocks), sublane)
            block_rows = max(min(block_rows, target), sublane)
    grid = (pl.cdiv(rows, block_rows),)

    # --- lane-dense 2-D slab (pad only the <cols tail, if any) -------------
    x_flat = x.reshape(-1)
    if n_pad != n:
        # TODO(synk): truly ragged sizes still pay one O(N) pad + one O(N)
        # slice; a fully copy-free ragged path needs manual 1-D DMA or
        # verified input-fusion support.
        x_flat = jnp.pad(x_flat, (0, n_pad - n))
    x2d = x_flat.reshape(rows, cols)

    kernel = functools.partial(
        _uniform_quantize_kernel, scale=scale, offset=offset, level=level
    )

    y2d = pl.pallas_call(
        kernel,
        out_shape=jax.ShapeDtypeStruct((rows, cols), x2d.dtype),
        grid_spec=pltpu.PrefetchScalarGridSpec(
            num_scalar_prefetch=0,
            grid=grid,
            in_specs=[pl.BlockSpec((block_rows, cols), lambda i: (i, 0))],
            out_specs=pl.BlockSpec((block_rows, cols), lambda i: (i, 0)),
        ),
        compiler_params=pltpu.CompilerParams(
            dimension_semantics=("parallel",),
            vmem_limit_bytes=vmem_limit,
        ),
        cost_estimate=pl.CostEstimate(
            flops=5 * n_pad,
            transcendentals=0,
            bytes_accessed=2 * n_pad * itemsize,
        ),
    )(x2d)

    if n_pad != n:
        return y2d.reshape(-1)[:n].reshape(orig_shape)
    return y2d.reshape(orig_shape)


class UniformQuantization:
    """JAX/Pallas port of diffsptk.UniformQuantization (forward only)."""
    # TODO(synk): straight-through backward (grad copied from next module) is
    # not part of the forward Pallas kernel.

    def __init__(self, abs_max=1.0, n_bit=8, quantizer="mid-rise"):
        assert 0 < abs_max
        assert 1 <= n_bit
        self.abs_max = float(abs_max)
        if quantizer == 0 or quantizer == "mid-rise":
            self.level = int(2 ** n_bit)
            self.quantizer = "mid-rise"
        elif quantizer == 1 or quantizer == "mid-tread":
            self.level = int(2 ** n_bit) - 1
            self.quantizer = "mid-tread"
        else:
            raise ValueError(f"quantizer {quantizer} is not supported")

        scale = self.level / (2.0 * self.abs_max)
        if self.quantizer == "mid-rise":
            offset = float(self.level // 2)
        else:
            # mid-tread: round-half-away == floor(w + 0.5) after the clip.
            offset = float((self.level - 1) // 2) + 0.5

        block_bytes, vmem_limit, min_blocks = _tpu_config()
        self._fn = jax.jit(functools.partial(
            _forward,
            scale=scale,
            offset=offset,
            level=self.level,
            block_bytes=block_bytes,
            vmem_limit=vmem_limit,
            min_blocks=min_blocks,
        ))

    def __call__(self, x):
        return self._fn(x)


def _reference(x, abs_max, level, quantizer):
    x = x.astype(jnp.float32) * level / (2.0 * abs_max)
    if quantizer == "mid-rise":
        y = jnp.floor(x + level // 2)
    else:
        xx = x + (level - 1) // 2
        y = jnp.trunc(xx + 0.5 * jnp.sign(xx))
    return jnp.clip(y, 0.0, level - 1)


if __name__ == "__main__":
    key = jax.random.PRNGKey(0)
    k1, k2, k3 = jax.random.split(key, 3)

    ok = True

    # Small NCHW-like tensor (2048 elems -> 512-aligned zero-copy path).
    x = jax.random.uniform(k1, (2, 4, 16, 16), dtype=jnp.float32,
                           minval=-4.0, maxval=4.0)

    # mid-rise, abs_max=4, n_bit=2
    q_rise = UniformQuantization(abs_max=4.0, n_bit=2, quantizer="mid-rise")
    y_rise = jax.block_until_ready(q_rise(x))
    ok &= bool(jnp.allclose(y_rise, _reference(x, 4.0, q_rise.level, "mid-rise")))

    # mid-tread, abs_max=1, n_bit=8
    q_tread = UniformQuantization(abs_max=1.0, n_bit=8, quantizer="mid-tread")
    x2 = jnp.clip(x / 4.0, -1.0, 1.0)
    y_tread = jax.block_until_ready(q_tread(x2))
    ok &= bool(jnp.allclose(y_tread, _reference(x2, 1.0, q_tread.level, "mid-tread")))

    # bf16 input, mid-tread (internal f32 math keeps indices exact)
    x_bf16 = x2.astype(jnp.bfloat16)
    y_bf16 = jax.block_until_ready(q_tread(x_bf16))
    ref_bf16 = _reference(x_bf16, 1.0, q_tread.level, "mid-tread").astype(jnp.bfloat16)
    ok &= bool(jnp.allclose(y_bf16.astype(jnp.float32), ref_bf16.astype(jnp.float32)))

    # Docstring example: ramp(-4, 4), 9 elements -> ragged tail-pad path.
    ramp = jnp.arange(-4.0, 5.0, dtype=jnp.float32)
    y_ramp = jax.block_until_ready(q_rise(ramp)).astype(jnp.int32)
    expected = jnp.array([0, 0, 1, 1, 2, 2, 3, 3, 3], dtype=jnp.int32)
    ok &= bool(jnp.array_equal(y_ramp, expected))

    # Medium tensor to exercise the multi-block grid with a partial last block
    # (rows not a multiple of block_rows) -> validates the cdiv-grid path.
    x_big = jax.random.uniform(k2, (2100, 512), dtype=jnp.float32,
                               minval=-1.0, maxval=1.0)
    q8 = UniformQuantization(abs_max=1.0, n_bit=8, quantizer="mid-rise")
    y_big = jax.block_until_ready(q8(x_big))
    ok &= bool(jnp.allclose(y_big, _reference(x_big, 1.0, q8.level, "mid-rise")))

    # 768 elements: divisible by 256 but not 512 -> narrower zero-copy slab.
    x_small = jax.random.uniform(k3, (6, 128), dtype=jnp.float32,
                                 minval=-1.0, maxval=1.0)
    y_small = jax.block_until_ready(q_tread(x_small))
    ok &= bool(jnp.allclose(y_small, _reference(x_small, 1.0, q_tread.level, "mid-tread")))

    if ok:
        print("KERNEL_OK")
    else:
        print("MISMATCH")
</pallas_src>

<mosaic_0001>
module attributes {stable_mosaic.version = 11 : i64} {
  func.func @_uniform_quantize_kernel(%arg0: i32, %arg1: memref<4x512xf32, #tpu.memory_space<vmem>>, %arg2: memref<4x512xf32, #tpu.memory_space<vmem>>) attributes {dimension_semantics = [#tpu.dimension_semantics<parallel>], iteration_bounds = array<i64: 1>, scalar_prefetch = 0 : i64, scratch_operands = 0 : i64, tpu.core_type = #tpu.core_type<tc>, window_params = [{transform_indices = @transform_0, window_bounds = array<i64: 4, 512>}, {transform_indices = @transform_1, window_bounds = array<i64: 4, 512>}]} {
    %c0 = arith.constant 0 : index
    %c0_0 = arith.constant 0 : index
    %0 = vector.load %arg1[%c0, %c0_0] : memref<4x512xf32, #tpu.memory_space<vmem>>, vector<4x512xf32>
    %cst = arith.constant 5.000000e-01 : f32
    %1 = vector.broadcast %cst : f32 to vector<4x512xf32>
    %2 = arith.mulf %0, %1 : vector<4x512xf32>
    %cst_1 = arith.constant 2.000000e+00 : f32
    %3 = vector.broadcast %cst_1 : f32 to vector<4x512xf32>
    %4 = arith.addf %2, %3 : vector<4x512xf32>
    %5 = math.floor %4 : vector<4x512xf32>
    %cst_2 = arith.constant 0.000000e+00 : f32
    %cst_3 = arith.constant 3.000000e+00 : f32
    %6 = vector.broadcast %cst_2 : f32 to vector<4x512xf32>
    %7 = arith.maximumf %6, %5 : vector<4x512xf32>
    %8 = vector.broadcast %cst_3 : f32 to vector<4x512xf32>
    %9 = arith.minimumf %8, %7 : vector<4x512xf32>
    %c0_4 = arith.constant 0 : index
    %c0_5 = arith.constant 0 : index
    %10 = vector.load %arg2[%c0_4, %c0_5] : memref<4x512xf32, #tpu.memory_space<vmem>>, vector<4x512xf32>
    tpu.vector_store %arg2[%c0_4, %c0_5], %9 {strides = array<i32>} : memref<4x512xf32, #tpu.memory_space<vmem>>, vector<4x512xf32>,
    return
  }
  func.func @transform_0(%arg0: i32) -> (i32, i32) {
    %c0_i32 = arith.constant 0 : i32
    %c0_i32_0 = arith.constant 0 : i32
    return %arg0, %c0_i32 : i32, i32
  }
  func.func @transform_1(%arg0: i32) -> (i32, i32) {
    %c0_i32 = arith.constant 0 : i32
    %c0_i32_0 = arith.constant 0 : i32
    return %arg0, %c0_i32 : i32, i32
  }
}

</mosaic_0001>

<bundles_post_ra>
// kernel: _forward.1
= control target key start
LH: loop header
LB: loop body
LE: loop exit
PB: predicated region body
PF: predicated region fallthrough
CT: control target
= control target key end

     0   :  { %s48_s0 = inlined_call_operand.vmem [shape: f32[4,512], index: 0, kind: input, shape index: {}]   ;;  %s49_s1 = inlined_call_operand.vmem [shape: f32[4,512], index: 1, kind: output, shape index: {}]  }
   0x1   :  { %v8_v0 = vld [vmem:[%s48_s0] sm:$0xff]  ;;  %v9_v1 = vld [vmem:[%s48_s0 + $0x8] sm:$0xff] }
   0x2   :  { %v10_v2 = vmul.f32 0.5, %v8_v0  ;;  %v11_v3 = vmul.f32 0.5, %v9_v1 }
   0x4   :  { %v12_v4 = vadd.f32 2.0, %v10_v2  ;;  %v13_v5 = vadd.f32 2.0, %v11_v3 }
   0x6   :  { %v14_v6 = vfloor.f32 %v12_v4  ;;  %v15_v7 = vfloor.f32 %v13_v5 }
   0x8   :  { %v16_v8 = vmax.f32 %v14_v6, 0.0  ;;  %v17_v9 = vmax.f32 %v15_v7, 0.0 }
   0xa   :  { %v18_v10 = vmin.f32 %v16_v8, 3.0  ;;  %v19_v11 = vmin.f32 %v17_v9, 3.0 }
   0xc   :  { %20 = vst [vmem:[%s49_s1] sm:$0xff] %v18_v10  ;;  %21 = vst [vmem:[%s49_s1 + $0x8] sm:$0xff] %v19_v11 }

</bundles_post_ra>
